<compile_context>
chip_gen: v7x
topology: tpu7x:2x2x1
jax: 0.10.0
libtpu: 0.0.40
codegen_flags: <defaults>
</compile_context>

<pallas_src>
import math

import jax
import jax.numpy as jnp
from jax.experimental import pallas as pl
from jax.experimental.pallas import tpu as pltpu


def _round_up(x, m):
    return ((x + m - 1) // m) * m


def _vmem_capacity_bytes():
    """Per-core VMEM capacity; conservative 64 MiB (v7x) if the query fails."""
    try:
        return int(pltpu.get_tpu_info().vmem_capacity_bytes)
    except Exception:
        return 64 * 1024 * 1024


def _vmem_need_bytes(Nb, Tb, Dp, Hp, w_bytes):
    """Estimated VMEM working set of one grid step (pipeline double buffers)."""
    return (
        2 * Tb * Nb * Dp * 4          # x blocks (double-buffered, f32)
        + 2 * Tb * Nb * Hp * 4        # out blocks (double-buffered, f32)
        + 2 * Tb * Nb * Hp * 4        # a_scratch + projection-GEMM headroom
        + 2 * Dp * Hp * w_bytes       # Wx (grid-invariant; pipeline allocs 2)
        + 2 * Hp * Hp * w_bytes       # Wh (grid-invariant; pipeline allocs 2)
        + 2 * Nb * Hp * 4             # h0
        + Nb * Hp * 4                 # hidden-state carry scratch
        + 2 * Hp * 4                  # bias
    )


def _choose_time_block(T, Nb, Dp, Hp, w_bytes, budget, requested=None):
    """Largest Tb fitting the VMEM budget, preferring divisors of T (no tail)."""
    cap = max(1, min(T, 64))          # also bounds the unrolled inner loop
    if requested is not None:
        return max(1, min(int(requested), cap))
    best = 1
    for tb in range(1, cap + 1):
        if _vmem_need_bytes(Nb, tb, Dp, Hp, w_bytes) <= budget:
            best = tb
    # Prefer an (at most 2x smaller) block that divides T exactly, so no
    # padded tail timesteps are ever computed.
    for tb in range(best, max(best // 2, 1) - 1, -1):
        if T % tb == 0:
            return tb
    return best


def _rnn_kernel(x_ref, h0_ref, wx_ref, wh_ref, b_ref, out_ref, h_carry,
                a_scratch):
    """One (batch-block, time-block) grid step.

    x_ref:     (Tb, Nb, Dp)  time-major input block (f32)
    h0_ref:    (Nb, Hp)      initial hidden state for this batch block (f32)
    wx_ref:    (Dp, Hp)      input weights (matmul dtype, grid-invariant)
    wh_ref:    (Hp, Hp)      recurrent weights (matmul dtype, grid-invariant)
    b_ref:     (1, Hp)       bias (f32, grid-invariant)
    out_ref:   (Tb, Nb, Hp)  hidden states for this block (f32, time-major)
    h_carry:   (Nb, Hp)      f32 hidden-state carry across time blocks
    a_scratch: (Tb*Nb, Hp)   f32 per-block pre-activations
    """
    t_blk = pl.program_id(1)

    @pl.when(t_blk == 0)
    def _():
        h_carry[...] = h0_ref[...]

    tb, nb, dp = x_ref.shape
    mm_dtype = wh_ref.dtype

    # --- Parallel part: whole-block input projection A = x @ Wx + b as ONE
    # large MXU GEMM (amortizes Wx weight loads over Tb*Nb rows; no serial
    # dependence). The (Tb, Nb, Dp) -> (Tb*Nb, Dp) collapse is layout-free
    # because Nb is always a multiple of 8 (f32 sublane tiling).
    x2d = x_ref[...].reshape(tb * nb, dp).astype(mm_dtype)
    a_scratch[...] = (
        jnp.dot(x2d, wx_ref[...], preferred_element_type=jnp.float32)
        + b_ref[...]
    )

    # --- Serial recurrence: only h @ Wh -> tanh sits on the latency chain.
    h = h_carry[...]
    for i in range(tb):
        # wh_ref is read inside the loop (not hoisted) so its live range stays
        # bounded across the fully-unrolled time loop.
        h = jnp.tanh(
            a_scratch[pl.ds(i * nb, nb), :]
            + jnp.dot(h.astype(mm_dtype), wh_ref[...],
                      preferred_element_type=jnp.float32)
        )
        out_ref[i] = h.astype(out_ref.dtype)
    h_carry[...] = h


def rnn_forward_pallas(x, h0, Wx, Wh, b, *, time_block=None,
                       matmul_dtype=jnp.bfloat16):
    """x: (N, T, D), h0: (N, H), Wx: (D, H), Wh: (H, H), b: (H,) -> (N, T, H)."""
    N, T, D = x.shape
    H = h0.shape[1]
    f32 = jnp.float32

    Hp = _round_up(H, 128)
    Dp = _round_up(D, 128)

    # ---- Batch tiling: lane/sublane-dense, and >=2 batch blocks whenever it
    # is free so a second TensorCore gets its own independent recurrence chain.
    Np = _round_up(N, 8)
    if Np >= 256:
        Nb = 256 if Np % 256 == 0 else 128
    elif Np >= 16 and (Np // 2) % 8 == 0:
        Nb = Np // 2
    else:
        Nb = Np
    Np = _round_up(Np, Nb)

    # ---- Generation-aware time blocking from the actual VMEM capacity
    # (128 MiB on v5e/v6e, 64 MiB per core on v7x), with headroom.
    w_bytes = jnp.dtype(matmul_dtype).itemsize
    capacity = _vmem_capacity_bytes()
    budget = max(capacity - 16 * 1024 * 1024, 16 * 1024 * 1024)
    Tb = _choose_time_block(T, Nb, Dp, Hp, w_bytes, budget, time_block)
    Tp = _round_up(T, Tb)

    # ---- Padded / laid-out operands. Padded hidden columns stay exactly zero
    # through the recurrence (pad columns of Wx/Wh/b are zero); padded batch
    # rows and padded tail timesteps are sliced off at the end. x is
    # padded + transposed to time-major in ONE fused XLA copy (far cheaper
    # than materializing the f32 pre-activation tensor in HBM).
    x_tm = jnp.transpose(
        jnp.pad(x.astype(f32), ((0, Np - N), (0, Tp - T), (0, Dp - D))),
        (1, 0, 2))
    wx_p = jnp.pad(Wx.astype(matmul_dtype), ((0, Dp - D), (0, Hp - H)))
    wh_p = jnp.pad(Wh.astype(matmul_dtype), ((0, Hp - H), (0, Hp - H)))
    b_p = jnp.pad(b.astype(f32), (0, Hp - H)).reshape(1, Hp)
    h0_p = jnp.pad(h0.astype(f32), ((0, Np - N), (0, Hp - H)))

    grid = (Np // Nb, Tp // Tb)

    need = _vmem_need_bytes(Nb, Tb, Dp, Hp, w_bytes)
    vmem_limit = int(min(max(int(1.25 * need) + (8 << 20), 32 << 20), capacity))

    out_tm = pl.pallas_call(
        _rnn_kernel,
        out_shape=jax.ShapeDtypeStruct((Tp, Np, Hp), f32),
        grid_spec=pltpu.PrefetchScalarGridSpec(
            num_scalar_prefetch=0,
            grid=grid,
            in_specs=[
                pl.BlockSpec((Tb, Nb, Dp), lambda n, t: (t, n, 0)),  # x block
                pl.BlockSpec((Nb, Hp), lambda n, t: (n, 0)),         # h0 block
                pl.BlockSpec((Dp, Hp), lambda n, t: (0, 0)),         # Wx (resident)
                pl.BlockSpec((Hp, Hp), lambda n, t: (0, 0)),         # Wh (resident)
                pl.BlockSpec((1, Hp), lambda n, t: (0, 0)),          # bias (resident)
            ],
            out_specs=pl.BlockSpec((Tb, Nb, Hp), lambda n, t: (t, n, 0)),
            scratch_shapes=[
                pltpu.VMEM((Nb, Hp), f32),        # hidden-state carry
                pltpu.VMEM((Tb * Nb, Hp), f32),   # per-block pre-activations
            ],
        ),
        compiler_params=pltpu.CompilerParams(
            # Batch axis is embarrassingly parallel (2 TCs on v7x); the time
            # axis carries the recurrence and MUST stay "arbitrary"/innermost.
            dimension_semantics=("parallel", "arbitrary"),
            vmem_limit_bytes=vmem_limit,
        ),
    )(x_tm, h0_p, wx_p, wh_p, b_p)

    # Un-pad and return in the PyTorch (N, T, H) convention.
    return jnp.transpose(out_tm[:T, :N, :H], (1, 0, 2)).astype(x.dtype)


def rnn_forward_ref(x, h0, Wx, Wh, b):
    hi = jax.lax.Precision.HIGHEST

    def step(prev_h, x_t):
        nh = jnp.tanh(jnp.dot(x_t, Wx, precision=hi)
                      + jnp.dot(prev_h, Wh, precision=hi) + b)
        return nh, nh

    _, hs = jax.lax.scan(step, h0, jnp.transpose(x, (1, 0, 2)))
    return jnp.transpose(hs, (1, 0, 2))


if __name__ == "__main__":
    key = jax.random.PRNGKey(0)

    # --- config 1: module-consistent toy shapes (batch=2, seq=8, D=16, H=32);
    # time_block=4 so the hidden-state carry across grid steps is exercised.
    N, T, D, H = 2, 8, 16, 32
    k_x, k_h0, k_wx, k_wh = jax.random.split(key, 4)
    x = jax.random.normal(k_x, (N, T, D), dtype=jnp.float32)
    h0 = jax.random.normal(k_h0, (N, H), dtype=jnp.float32)
    # Deterministic parameter init mirroring the PyTorch __init__:
    #   Wx ~ randn(D,H)/sqrt(D); Wh ~ randn(H,H)/sqrt(H); b = zeros(H)
    Wx = jax.random.normal(k_wx, (D, H), dtype=jnp.float32) / math.sqrt(D)
    Wh = jax.random.normal(k_wh, (H, H), dtype=jnp.float32) / math.sqrt(H)
    b = jnp.zeros((H,), dtype=jnp.float32)

    out = rnn_forward_pallas(x, h0, Wx, Wh, b, time_block=4,
                             matmul_dtype=jnp.float32)
    out = jax.block_until_ready(out)
    ref = rnn_forward_ref(x, h0, Wx, Wh, b)
    assert out.shape == (N, T, H)
    assert jnp.allclose(out, ref, atol=3e-5, rtol=1e-5), "mismatch vs reference (cfg1)"

    # --- config 2: ragged shapes exercising N/D/H padding and a padded tail
    # time block (T=10, Tb=4 -> Tp=12).
    N2, T2, D2, H2 = 3, 10, 20, 48
    k2 = jax.random.split(jax.random.PRNGKey(1), 4)
    x2 = jax.random.normal(k2[0], (N2, T2, D2), dtype=jnp.float32)
    h02 = jax.random.normal(k2[1], (N2, H2), dtype=jnp.float32)
    Wx2 = jax.random.normal(k2[2], (D2, H2), dtype=jnp.float32) / math.sqrt(D2)
    Wh2 = jax.random.normal(k2[3], (H2, H2), dtype=jnp.float32) / math.sqrt(H2)
    b2 = jnp.zeros((H2,), dtype=jnp.float32)

    out2 = rnn_forward_pallas(x2, h02, Wx2, Wh2, b2, time_block=4,
                              matmul_dtype=jnp.float32)
    out2 = jax.block_until_ready(out2)
    ref2 = rnn_forward_ref(x2, h02, Wx2, Wh2, b2)
    assert out2.shape == (N2, T2, H2)
    assert jnp.allclose(out2, ref2, atol=3e-5, rtol=1e-5), "mismatch vs reference (cfg2)"

    # --- config 3: two batch blocks ("parallel" axis) x three time blocks,
    # run both in exact f32 and on the default bf16-operand fast path.
    N3, T3, D3, H3 = 16, 24, 32, 64
    k3 = jax.random.split(jax.random.PRNGKey(2), 4)
    x3 = jax.random.normal(k3[0], (N3, T3, D3), dtype=jnp.float32)
    h03 = jax.random.normal(k3[1], (N3, H3), dtype=jnp.float32)
    Wx3 = jax.random.normal(k3[2], (D3, H3), dtype=jnp.float32) / math.sqrt(D3)
    Wh3 = jax.random.normal(k3[3], (H3, H3), dtype=jnp.float32) / math.sqrt(H3)
    b3 = jnp.zeros((H3,), dtype=jnp.float32)

    ref3 = rnn_forward_ref(x3, h03, Wx3, Wh3, b3)
    out3 = rnn_forward_pallas(x3, h03, Wx3, Wh3, b3, time_block=8,
                              matmul_dtype=jnp.float32)
    out3 = jax.block_until_ready(out3)
    assert out3.shape == (N3, T3, H3)
    assert jnp.allclose(out3, ref3, atol=3e-5, rtol=1e-5), "mismatch vs reference (cfg3/f32)"

    # bf16 MXU-operand fast path (per-step rounding compounds over T steps).
    out3_fast = rnn_forward_pallas(x3, h03, Wx3, Wh3, b3, time_block=8)
    out3_fast = jax.block_until_ready(out3_fast)
    assert jnp.allclose(out3_fast, ref3, atol=5e-2), "mismatch vs reference (cfg3/bf16)"

    print("KERNEL_OK")
</pallas_src>

<mosaic_0001>
module attributes {stable_mosaic.version = 11 : i64} {
  func.func @_rnn_kernel(%arg0: i32, %arg1: i32, %arg2: memref<4x8x128xf32, #tpu.memory_space<vmem>>, %arg3: memref<8x128xf32, #tpu.memory_space<vmem>>, %arg4: memref<128x128xf32, #tpu.memory_space<vmem>>, %arg5: memref<128x128xf32, #tpu.memory_space<vmem>>, %arg6: memref<1x128xf32, #tpu.memory_space<vmem>>, %arg7: memref<4x8x128xf32, #tpu.memory_space<vmem>>, %arg8: memref<8x128xf32, #tpu.memory_space<vmem>>, %arg9: memref<32x128xf32, #tpu.memory_space<vmem>>) attributes {dimension_semantics = [#tpu.dimension_semantics<parallel>, #tpu.dimension_semantics<arbitrary>], iteration_bounds = array<i64: 1, 2>, scalar_prefetch = 0 : i64, scratch_operands = 2 : i64, tpu.core_type = #tpu.core_type<tc>, window_params = [{transform_indices = @transform_0, window_bounds = array<i64: 4, 8, 128>}, {transform_indices = @transform_1, window_bounds = array<i64: 8, 128>}, {pipeline_mode = #tpu.pipeline_mode<synchronous>, transform_indices = @transform_2, window_bounds = array<i64: 128, 128>}, {pipeline_mode = #tpu.pipeline_mode<synchronous>, transform_indices = @transform_3, window_bounds = array<i64: 128, 128>}, {pipeline_mode = #tpu.pipeline_mode<synchronous>, transform_indices = @transform_4, window_bounds = array<i64: 1, 128>}, {transform_indices = @transform_5, window_bounds = array<i64: 4, 8, 128>}]} {
    %c0_i32 = arith.constant 0 : i32
    %0 = arith.cmpi eq, %arg1, %c0_i32 : i32
    %1 = arith.extui %0 : i1 to i32
    %c0_i32_0 = arith.constant 0 : i32
    %2 = arith.cmpi ne, %1, %c0_i32_0 : i32
    scf.if %2 {
      %c0_39 = arith.constant 0 : index
      %c0_40 = arith.constant 0 : index
      %45 = vector.load %arg3[%c0_39, %c0_40] : memref<8x128xf32, #tpu.memory_space<vmem>>, vector<8x128xf32>
      %c0_41 = arith.constant 0 : index
      %c0_42 = arith.constant 0 : index
      %46 = vector.load %arg8[%c0_41, %c0_42] : memref<8x128xf32, #tpu.memory_space<vmem>>, vector<8x128xf32>
      tpu.vector_store %arg8[%c0_41, %c0_42], %45 {strides = array<i32>} : memref<8x128xf32, #tpu.memory_space<vmem>>, vector<8x128xf32>,
    } else {
    }
    %c0 = arith.constant 0 : index
    %c0_1 = arith.constant 0 : index
    %c0_2 = arith.constant 0 : index
    %3 = vector.load %arg2[%c0, %c0_1, %c0_2] : memref<4x8x128xf32, #tpu.memory_space<vmem>>, vector<4x8x128xf32>
    %4 = vector.shape_cast %3 : vector<4x8x128xf32> to vector<32x128xf32>
    %c0_3 = arith.constant 0 : index
    %c0_4 = arith.constant 0 : index
    %5 = vector.load %arg4[%c0_3, %c0_4] : memref<128x128xf32, #tpu.memory_space<vmem>>, vector<128x128xf32>
    %cst = arith.constant dense<0.000000e+00> : vector<32x128xf32>
    %6 = tpu.matmul %4, %5, %cst {dimension_numbers = #tpu.dot_dimension_numbers<[1], [0], [0], [1], [0, 0, 1, 1], [], []>} : vector<32x128xf32>, vector<128x128xf32>, vector<32x128xf32> -> vector<32x128xf32>
    %c0_5 = arith.constant 0 : index
    %c0_6 = arith.constant 0 : index
    %7 = vector.load %arg6[%c0_5, %c0_6] : memref<1x128xf32, #tpu.memory_space<vmem>>, vector<1x128xf32>
    %8 = vector.broadcast %7 : vector<1x128xf32> to vector<32x128xf32>
    %9 = arith.addf %6, %8 : vector<32x128xf32>
    %c0_7 = arith.constant 0 : index
    %c0_8 = arith.constant 0 : index
    %10 = vector.load %arg9[%c0_7, %c0_8] : memref<32x128xf32, #tpu.memory_space<vmem>>, vector<32x128xf32>
    tpu.vector_store %arg9[%c0_7, %c0_8], %9 {strides = array<i32>} : memref<32x128xf32, #tpu.memory_space<vmem>>, vector<32x128xf32>,
    %c0_9 = arith.constant 0 : index
    %c0_10 = arith.constant 0 : index
    %11 = vector.load %arg8[%c0_9, %c0_10] : memref<8x128xf32, #tpu.memory_space<vmem>>, vector<8x128xf32>
    %c0_11 = arith.constant 0 : index
    %c0_12 = arith.constant 0 : index
    %12 = vector.load %arg9[%c0_11, %c0_12] : memref<32x128xf32, #tpu.memory_space<vmem>>, vector<8x128xf32>
    %c0_13 = arith.constant 0 : index
    %c0_14 = arith.constant 0 : index
    %13 = vector.load %arg5[%c0_13, %c0_14] : memref<128x128xf32, #tpu.memory_space<vmem>>, vector<128x128xf32>
    %cst_15 = arith.constant dense<0.000000e+00> : vector<8x128xf32>
    %14 = tpu.matmul %11, %13, %cst_15 {dimension_numbers = #tpu.dot_dimension_numbers<[1], [0], [0], [1], [0, 0, 1, 1], [], []>} : vector<8x128xf32>, vector<128x128xf32>, vector<8x128xf32> -> vector<8x128xf32>
    %15 = arith.addf %12, %14 : vector<8x128xf32>
    %16 = math.tanh %15 : vector<8x128xf32>
    %c0_16 = arith.constant 0 : index
    %c0_17 = arith.constant 0 : index
    %c0_18 = arith.constant 0 : index
    %17 = vector.load %arg7[%c0_16, %c0_17, %c0_18] : memref<4x8x128xf32, #tpu.memory_space<vmem>>, vector<1x8x128xf32>
    %18 = vector.shape_cast %17 : vector<1x8x128xf32> to vector<8x128xf32>
    %19 = vector.shape_cast %16 : vector<8x128xf32> to vector<1x8x128xf32>
    tpu.vector_store %arg7[%c0_16, %c0_17, %c0_18], %19 {strides = array<i32>} : memref<4x8x128xf32, #tpu.memory_space<vmem>>, vector<1x8x128xf32>,
    %c8 = arith.constant 8 : index
    %c0_19 = arith.constant 0 : index
    %20 = vector.load %arg9[%c8, %c0_19] : memref<32x128xf32, #tpu.memory_space<vmem>>, vector<8x128xf32>
    %c0_20 = arith.constant 0 : index
    %c0_21 = arith.constant 0 : index
    %21 = vector.load %arg5[%c0_20, %c0_21] : memref<128x128xf32, #tpu.memory_space<vmem>>, vector<128x128xf32>
    %cst_22 = arith.constant dense<0.000000e+00> : vector<8x128xf32>
    %22 = tpu.matmul %16, %21, %cst_22 {dimension_numbers = #tpu.dot_dimension_numbers<[1], [0], [0], [1], [0, 0, 1, 1], [], []>} : vector<8x128xf32>, vector<128x128xf32>, vector<8x128xf32> -> vector<8x128xf32>
    %23 = arith.addf %20, %22 : vector<8x128xf32>
    %24 = math.tanh %23 : vector<8x128xf32>
    %c1 = arith.constant 1 : index
    %c0_23 = arith.constant 0 : index
    %c0_24 = arith.constant 0 : index
    %25 = vector.load %arg7[%c1, %c0_23, %c0_24] : memref<4x8x128xf32, #tpu.memory_space<vmem>>, vector<1x8x128xf32>
    %26 = vector.shape_cast %25 : vector<1x8x128xf32> to vector<8x128xf32>
    %27 = vector.shape_cast %24 : vector<8x128xf32> to vector<1x8x128xf32>
    tpu.vector_store %arg7[%c1, %c0_23, %c0_24], %27 {strides = array<i32>} : memref<4x8x128xf32, #tpu.memory_space<vmem>>, vector<1x8x128xf32>,
    %c16 = arith.constant 16 : index
    %c0_25 = arith.constant 0 : index
    %28 = vector.load %arg9[%c16, %c0_25] : memref<32x128xf32, #tpu.memory_space<vmem>>, vector<8x128xf32>
    %c0_26 = arith.constant 0 : index
    %c0_27 = arith.constant 0 : index
    %29 = vector.load %arg5[%c0_26, %c0_27] : memref<128x128xf32, #tpu.memory_space<vmem>>, vector<128x128xf32>
    %cst_28 = arith.constant dense<0.000000e+00> : vector<8x128xf32>
    %30 = tpu.matmul %24, %29, %cst_28 {dimension_numbers = #tpu.dot_dimension_numbers<[1], [0], [0], [1], [0, 0, 1, 1], [], []>} : vector<8x128xf32>, vector<128x128xf32>, vector<8x128xf32> -> vector<8x128xf32>
    %31 = arith.addf %28, %30 : vector<8x128xf32>
    %32 = math.tanh %31 : vector<8x128xf32>
    %c2 = arith.constant 2 : index
    %c0_29 = arith.constant 0 : index
    %c0_30 = arith.constant 0 : index
    %33 = vector.load %arg7[%c2, %c0_29, %c0_30] : memref<4x8x128xf32, #tpu.memory_space<vmem>>, vector<1x8x128xf32>
    %34 = vector.shape_cast %33 : vector<1x8x128xf32> to vector<8x128xf32>
    %35 = vector.shape_cast %32 : vector<8x128xf32> to vector<1x8x128xf32>
    tpu.vector_store %arg7[%c2, %c0_29, %c0_30], %35 {strides = array<i32>} : memref<4x8x128xf32, #tpu.memory_space<vmem>>, vector<1x8x128xf32>,
    %c24 = arith.constant 24 : index
    %c0_31 = arith.constant 0 : index
    %36 = vector.load %arg9[%c24, %c0_31] : memref<32x128xf32, #tpu.memory_space<vmem>>, vector<8x128xf32>
    %c0_32 = arith.constant 0 : index
    %c0_33 = arith.constant 0 : index
    %37 = vector.load %arg5[%c0_32, %c0_33] : memref<128x128xf32, #tpu.memory_space<vmem>>, vector<128x128xf32>
    %cst_34 = arith.constant dense<0.000000e+00> : vector<8x128xf32>
    %38 = tpu.matmul %32, %37, %cst_34 {dimension_numbers = #tpu.dot_dimension_numbers<[1], [0], [0], [1], [0, 0, 1, 1], [], []>} : vector<8x128xf32>, vector<128x128xf32>, vector<8x128xf32> -> vector<8x128xf32>
    %39 = arith.addf %36, %38 : vector<8x128xf32>
    %40 = math.tanh %39 : vector<8x128xf32>
    %c3 = arith.constant 3 : index
    %c0_35 = arith.constant 0 : index
    %c0_36 = arith.constant 0 : index
    %41 = vector.load %arg7[%c3, %c0_35, %c0_36] : memref<4x8x128xf32, #tpu.memory_space<vmem>>, vector<1x8x128xf32>
    %42 = vector.shape_cast %41 : vector<1x8x128xf32> to vector<8x128xf32>
    %43 = vector.shape_cast %40 : vector<8x128xf32> to vector<1x8x128xf32>
    tpu.vector_store %arg7[%c3, %c0_35, %c0_36], %43 {strides = array<i32>} : memref<4x8x128xf32, #tpu.memory_space<vmem>>, vector<1x8x128xf32>,
    %c0_37 = arith.constant 0 : index
    %c0_38 = arith.constant 0 : index
    %44 = vector.load %arg8[%c0_37, %c0_38] : memref<8x128xf32, #tpu.memory_space<vmem>>, vector<8x128xf32>
    tpu.vector_store %arg8[%c0_37, %c0_38], %40 {strides = array<i32>} : memref<8x128xf32, #tpu.memory_space<vmem>>, vector<8x128xf32>,
    return
  }
  func.func @transform_0(%arg0: i32, %arg1: i32) -> (i32, i32, i32) {
    %c0_i32 = arith.constant 0 : i32
    %c0_i32_0 = arith.constant 0 : i32
    return %arg1, %arg0, %c0_i32 : i32, i32, i32
  }
  func.func @transform_1(%arg0: i32, %arg1: i32) -> (i32, i32) {
    %c0_i32 = arith.constant 0 : i32
    %c0_i32_0 = arith.constant 0 : i32
    return %arg0, %c0_i32 : i32, i32
  }
  func.func @transform_2(%arg0: i32, %arg1: i32) -> (i32, i32) {
    %c0_i32 = arith.constant 0 : i32
    %c0_i32_0 = arith.constant 0 : i32
    %c0_i32_1 = arith.constant 0 : i32
    return %c0_i32, %c0_i32_0 : i32, i32
  }
  func.func @transform_3(%arg0: i32, %arg1: i32) -> (i32, i32) {
    %c0_i32 = arith.constant 0 : i32
    %c0_i32_0 = arith.constant 0 : i32
    %c0_i32_1 = arith.constant 0 : i32
    return %c0_i32, %c0_i32_0 : i32, i32
  }
  func.func @transform_4(%arg0: i32, %arg1: i32) -> (i32, i32) {
    %c0_i32 = arith.constant 0 : i32
    %c0_i32_0 = arith.constant 0 : i32
    %c0_i32_1 = arith.constant 0 : i32
    return %c0_i32, %c0_i32_0 : i32, i32
  }
  func.func @transform_5(%arg0: i32, %arg1: i32) -> (i32, i32, i32) {
    %c0_i32 = arith.constant 0 : i32
    %c0_i32_0 = arith.constant 0 : i32
    return %arg1, %arg0, %c0_i32 : i32, i32, i32
  }
}

</mosaic_0001>

<bundles_post_ra>
// kernel: tpu_custom_call.1
= control target key start
LH: loop header
LB: loop body
LE: loop exit
PB: predicated region body
PF: predicated region fallthrough
CT: control target
= control target key end

     0   :  { %s2094_s0 = inlined_call_operand.hbm [shape: f32[8,8,128], index: 0, kind: input, shape index: {}]   ;;  %s2095_s1 = inlined_call_operand.hbm [shape: f32[8,128], index: 1, kind: input, shape index: {}]   ;;  %s2096_s2 = inlined_call_operand.hbm [shape: f32[128,128], index: 2, kind: input, shape index: {}]   ;;  %s2097_s3 = inlined_call_operand.hbm [shape: f32[128,128], index: 3, kind: input, shape index: {}]   ;;  %s2098_s4 = inlined_call_operand.vmem [shape: f32[1,128], index: 4, kind: input, shape index: {}]   ;;  %s2099_s5 = inlined_call_operand.hbm [shape: f32[8,8,128], index: 5, kind: output, shape index: {}]  }
   0x1   :  { %2104 = sst [smem:[#allocation17_spill]] %s2095_s1 }
   0x2   :  { %10 = vsyncpa [#allocation5], 0 }
   0x3   :  { %12 = vsyncpa [#allocation5 + $0x1], 0 }
   0x4   :  { %13 = vsyncpa [#allocation8], 0 }
   0x5   :  { %14 = vsyncpa [#allocation11], 0 }
   0x6   :  { %15 = vsyncpa [#allocation6], 0 }
   0x7   :  { %17 = vsyncpa [#allocation6 + $0x1], 0  ;;  %s1707_s18 = smov 0   ;;  %s1709_s19 = smov 0  }
   0x8   :  { %s1711_s20 = smov 0   ;;  %s1713_s21 = smov 0  }
   0x9   :  { %s1715_s22 = smov 0   ;;  %s1717_s23 = smov 0  }
   0xa LB: > { %s929_s24 = sadd.s32 4294967295, %s1663_s23   ;;  %s930_s25 = sadd.s32 4294967294, %s1663_s23   ;;  %s1663_s23 = sphi %s1717_s23, %s23_s23   ;;  %s1659_s22 = sphi %s1715_s22, %s2125_s22   ;;  %s1655_s21 = sphi %s1713_s21, %s2124_s21   ;;  %s1651_s20 = sphi %s1711_s20, %s2123_s20   ;;  %s1647_s19 = sphi %s1709_s19, %s2122_s19   ;;  %s1643_s18 = sphi %s1707_s18, %s2121_s18  }
   0xb   : > { %p57_p0 = scmp.ne.s32.totalorder %s1647_s19, %s1643_s18  ;;  %p1741_p1 = scmp.eq.s32.totalorder %s929_s24, 0 }
   0xc   : > { %p1745_p2 = scmp.eq.s32.totalorder %s929_s24, 1  ;;  %p178_p3 = scmp.eq.s32.totalorder %s930_s25, 1 }
   0xd   : > { %s2105_s26 = scalar_select %p1741_p1, 1, 0 }
   0xe   : > { %s2106_s27 = scalar_select %p1745_p2, 1, 0 }
   0xf   : > { %p1751_p4 = por %p1741_p1, %p57_p0  ;;  %p931_p5 = scmp.ge.s32.totalorder %s1663_s23, 1 }
  0x10   : > { %p1756_p6 = por %p178_p3, %p57_p0  ;;  %p185_p7 = scmp.lt.s32.totalorder %s1663_s23, 3 }
  0x11   : > { %s2107_s28 = scalar_select %p1751_p4, 1, 0 }
  0x12   : > { %s2108_s29 = scalar_select %p1756_p6, 1, 0 }
  0x13   : > { %p1761_p8 = pnand %p931_p5, %p185_p7  ;;  %s1665_s6 = smov [#allocation7]  }
  0x14   : > { %s200_s7 = sshll.u32 %s1665_s6, 4  ;;  %s1666_s8 = smov [#allocation9]   ;;  %s201_s7 = int_to_ptr.vmem [resolvable:$true] %s200_s7 }
  0x15   : > { %s2109_s30 = scalar_select %p1761_p8, 1, 0 }
  0x16   : > { %p1367_p10 = pneg %p1761_p8  ;;  %s210_s9 = sshll.u32 %s1666_s8, 4  ;;  %s1774_s9 = int_to_ptr.vmem [resolvable:$true] %s210_s9 }
  0x17   : > { %s1667_s11 = smov [#allocation10]   ;;  %s2111_s1 = sld [smem:[#allocation17_spill]] }
  0x18   : > { %p1770_p11 = pnand %p1367_p10, %p1741_p1  ;;  %s1776_s12 = sshll.u32 %s1667_s11, 4  ;;  %s224_s12 = int_to_ptr.vmem [resolvable:$true] %s1776_s12 }
  0x1a   : > { %p1786_p13 = pneg %p1770_p11 }
  0x1d   : > { %s1459_s15 = scalar_lea.hbm %s2111_s1, 128 }
  0x1e   : > { %p1460_p12 = scmp.ne.s32.totalorder %s2111_s1, %s1459_s15  ;;  %p1466_p5 = scmp.lt.u32.totalorder %s1459_s15, %s2111_s1 }
  0x20   : > { %p1462_p0 = pnand %p1786_p13, %p1460_p12 }
  0x22   : > { %p1463_p3 = pneg %p1462_p0 }
  0x24   : > { %p1468_p7 = pnand %p1466_p5, %p1463_p3 }
  0x26   : > { %1471 = shalt.err (!%p1468_p7)
}
  0x27   : > { %s1472_s8 = scalar_lea.vmem %s201_s7, 128  ;;  %p1480_p1 = scmp.lt.s32.totalorder %s201_s7, %s201_s7 }
  0x28   : > { %p1473_p10 = scmp.ne.s32.totalorder %s201_s7, %s1472_s8  ;;  %p1481_p4 = scmp.lt.s32.totalorder %s1472_s8, %s1472_s8 }
  0x2a   : > { %p1475_p9 = pnand %p1473_p10, %p1786_p13  ;;  %p1482_p8 = por %p1481_p4, %p1480_p1 }
  0x2c   : > { %p1476_p6 = pneg %p1475_p9 }
  0x2e   : > { %p1483_p2 = pnand %p1482_p8, %p1476_p6 }
  0x30   : > { %1486 = shalt.err (!%p1483_p2)
}
  0x31   : > { %1370 = dma.hbm_to_vmem [thread:$0]  (!%p1770_p11), %s2111_s1, 128, %s201_s7, [#allocation8]  }
  0x32   : > { %s1487_s16 = scalar_lea.hbm %s2096_s2, 2048 }
  0x33   : > { %p1488_p9 = scmp.ne.s32.totalorder %s2096_s2, %s1487_s16  ;;  %p1494_p2 = scmp.lt.u32.totalorder %s1487_s16, %s2096_s2 }
  0x35   : > { %p1490_p12 = pnand %p1488_p9, %p1786_p13 }
  0x37   : > { %p1491_p1 = pneg %p1490_p12 }
  0x39   : > { %p1496_p4 = pnand %p1494_p2, %p1491_p1 }
  0x3b   : > { %1499 = shalt.err (!%p1496_p4)
}
  0x3c   : > { %s1500_s7 = scalar_lea.vmem %s1774_s9, 2048  ;;  %p1508_p3 = scmp.lt.s32.totalorder %s1774_s9, %s1774_s9 }
  0x3d   : > { %p1501_p6 = scmp.ne.s32.totalorder %s1774_s9, %s1500_s7  ;;  %p1509_p5 = scmp.lt.s32.totalorder %s1500_s7, %s1500_s7 }
  0x3f   : > { %p1503_p8 = pnand %p1501_p6, %p1786_p13  ;;  %p1510_p7 = por %p1509_p5, %p1508_p3 }
  0x41   : > { %p1504_p0 = pneg %p1503_p8 }
  0x43   : > { %p1511_p10 = pnand %p1510_p7, %p1504_p0 }
  0x45   : > { %1514 = shalt.err (!%p1511_p10)
}
  0x46   : > { %s1668_s11 = smov 128   ;;  %s1669_s13 = smov 8  }
  0x47   : > { %1373 = dma.hbm_to_vmem [thread:$0]  (!%p1770_p11), %s2096_s2, 2048, %s1774_s9, [#allocation8], %s1668_s11, %s1668_s11, %s1669_s13  }
  0x48   : > { %s1515_s25 = scalar_lea.hbm %s2097_s3, 2048 }
  0x49   : > { %p1516_p9 = scmp.ne.s32.totalorder %s2097_s3, %s1515_s25  ;;  %p1522_p2 = scmp.lt.u32.totalorder %s1515_s25, %s2097_s3 }
  0x4b   : > { %p1518_p12 = pnand %p1516_p9, %p1786_p13 }
  0x4d   : > { %p1519_p1 = pneg %p1518_p12 }
  0x4f   : > { %p1524_p4 = pnand %p1522_p2, %p1519_p1 }
  0x51   : > { %1527 = shalt.err (!%p1524_p4)
}
  0x52   : > { %s1528_s14 = scalar_lea.vmem %s224_s12, 2048  ;;  %p1536_p3 = scmp.lt.s32.totalorder %s224_s12, %s224_s12 }
  0x53   : > { %p1529_p6 = scmp.ne.s32.totalorder %s224_s12, %s1528_s14  ;;  %p1537_p5 = scmp.lt.s32.totalorder %s1528_s14, %s1528_s14 }
  0x55   : > { %p1531_p8 = pnand %p1529_p6, %p1786_p13  ;;  %p1538_p7 = por %p1537_p5, %p1536_p3 }
  0x57   : > { %p1532_p0 = pneg %p1531_p8 }
  0x59   : > { %p1539_p10 = pnand %p1538_p7, %p1532_p0 }
  0x5b   : > { %1542 = shalt.err (!%p1539_p10)
}
  0x5c   : > { %1376 = dma.hbm_to_vmem [thread:$0]  (!%p1770_p11), %s2097_s3, 2048, %s224_s12, [#allocation11], %s1668_s11, %s1668_s11, %s1669_s13  }
  0x5d   : > { %s44_s24 = sadd.s32 1, %s1651_s20  ;;  %s32_s10 = sadd.s32 1, %s1659_s22 }
  0x5e   : > { %p51_p13 = scmp.ne.s32.totalorder %s1651_s20, %s1647_s19  ;;  %p33_p9 = scmp.ge.s32.totalorder %s32_s10, 2 }
  0x5f   : > { %p52_p12 = scmp.eq.s32.totalorder %s1663_s23, 0  ;;  %p2113_p1 = scmp.ne.s32.totalorder %s2106_s27, 0 }
  0x60   : > { %p1388_p4 = scmp.lt.s32.totalorder %s1663_s23, 2  ;;  %s2127_s10 = smov (%p33_p9, %s32_s10), 0 }
  0x61   : > { %p1857_p2 = por %p2113_p1, %p51_p13  ;;  %p53_p6 = por %p52_p12, %p51_p13 }
  0x62   : > { %s240_s16 = sand.u32 1, %s1651_s20   ;;  %s39_s17 = ssub.s32 %s1659_s22, %s2127_s10 }
  0x63   : > { %p42_p8 = scmp.eq.s32.totalorder %s39_s17, 0  ;;  %s936_s12 = sshll.u32 %s240_s16, 5 }
  0x64   : > { %s955_s25 = sshll.u32 %s1659_s22, 9  ;;  %s244_s14 = scalar_lea.vmem [#allocation4], %s936_s12 }
  0x65   : > { %s1869_s6 = scalar_select %p42_p8, %s1651_s20, %s44_s24  }
  0x66   : > { %s1874_s27 = scalar_lea.hbm %s2094_s0, %s955_s25  ;;  %s252_s1 = sshll.u32 %s244_s14, 4  ;;  %s1876_s1 = int_to_ptr.vmem [resolvable:$true] %s252_s1 }
  0x67   : > { %p1880_p11 = pnand %p1388_p4, %p53_p6  ;;  %s1884_s24 = scalar_lea.sflag [#allocation5], %s240_s16 }
  0x68   : > { %s1543_s17 = scalar_lea.hbm %s1874_s27, 512  ;;  %s1548_s8 = scalar_lea.hbm %s2094_s0, 1024 }
  0x69   : > { %p1544_p0 = scmp.ne.s32.totalorder %s1874_s27, %s1543_s17  ;;  %p1545_p3 = pneg %p1880_p11 }
  0x6a   : > { %p1549_p10 = scmp.lt.u32.totalorder %s1874_s27, %s2094_s0  ;;  %p1550_p13 = scmp.lt.u32.totalorder %s1548_s8, %s1543_s17 }
  0x6b   : > { %p1546_p5 = pnand %p1545_p3, %p1544_p0  ;;  %p1552_p12 = scmp.lt.u32.totalorder %s1543_s17, %s1874_s27 }
  0x6c   : > { %p1551_p9 = por %p1550_p13, %p1549_p10 }
  0x6d   : > { %p1547_p7 = pneg %p1546_p5 }
  0x6e   : > { %p1553_p1 = por %p1552_p12, %p1551_p9 }
  0x70   : > { %p1554_p4 = pnand %p1553_p1, %p1547_p7 }
  0x72   : > { %1557 = shalt.err (!%p1554_p4)
}
  0x73   : > { %s1558_s16 = scalar_lea.vmem %s1876_s1, 512  ;;  %s1670_s12 = smov [#allocation4]  }
  0x74   : > { %p1559_p6 = scmp.ne.s32.totalorder %s1876_s1, %s1558_s16  ;;  %s1563_s25 = sshll.u32 %s1670_s12, 4  ;;  %s1564_s25 = int_to_ptr.vmem [resolvable:$false] %s1563_s25 }
  0x75   : > { %s1565_s7 = scalar_lea.vmem %s1564_s25, 1024  ;;  %p1566_p5 = scmp.lt.s32.totalorder %s1876_s1, %s1564_s25 }
  0x76   : > { %p1561_p8 = pnand %p1559_p6, %p1545_p3  ;;  %p1567_p10 = scmp.lt.s32.totalorder %s1565_s7, %s1558_s16 }
  0x78   : > { %p1562_p0 = pneg %p1561_p8  ;;  %p1568_p13 = por %p1567_p10, %p1566_p5 }
  0x7a   : > { %p1569_p9 = pnand %p1568_p13, %p1562_p0 }
  0x7c   : > { %1572 = shalt.err (!%p1569_p9)
}
  0x7d   : > { %1380 = dma.hbm_to_vmem [thread:$0]  (!%p1880_p11), %s1874_s27, 512, %s1876_s1, %s1884_s24, %s1668_s11, %s1668_s11, %s1669_s13  }
  0x7e   : > { %p2116_p3 = scmp.ne.s32.totalorder %s2109_s30, 0 }
  0x7f   : > { %s1918_s17 = sand.u32 (!%p2116_p3), 1, %s1647_s19   ;;  %p2117_p7 = scmp.ne.s32.totalorder (!%p2116_p3), %s2107_s28, 0 }
  0x80   : > { %264 = sbr.rel (%p2116_p3) target bundleno = 1103 (0x44f), region = 40  ;;  %s940_s8 = sshll.u32 (!%p2116_p3), %s1918_s17, 5 }
  0x81   : > { %s267_s14 = scalar_lea.sflag (!%p2116_p3), [#allocation5], %s1918_s17  ;;  %s1922_s16 = scalar_lea.vmem (!%p2116_p3), [#allocation4], %s940_s8 }
  0x87   : > { %1626 = dma.done.wait (%p2117_p7), %s267_s14, 512  }
  0x88   : > { %1628 = vsyncadd (%p2117_p7), %s267_s14, 4294966784  ;;  %p2118_p11 = scmp.ne.s32.totalorder %s2105_s26, 0 }
  0x8a   : > { %1630 = dma.done.wait (%p2118_p11), [#allocation8], 2176  }
  0x8b   : > { %1632 = vsyncadd (%p2118_p11), [#allocation8], 4294965120 }
  0x8c   : > { %1634 = dma.done.wait (%p2118_p11), [#allocation11], 2048  }
  0x8d   : > { %1636 = vsyncadd (%p2118_p11), [#allocation11], 4294965248  ;;  %s1936_s30 = scalar_lea.vmem [#allocation12], %s940_s8  ;;  %p945_p12 = scmp.ne.s32.totalorder %s1655_s21, 0 }
  0x8e   : > { %v315_v0 = vld [vmem:[#allocation7] sm:$0xff] (!%p945_p12) }
  0x8f   : > { %314 = sbr.rel (%p945_p12) target bundleno = 150 (0x96), region = 60  ;;  %316 = vst [vmem:[#allocation2] sm:$0xff] (!%p945_p12), %v315_v0 }
  0x96 PF: > { %v321_v1 = vld [vmem:[#allocation9] sm:$0xff]  ;;  %v322_v2 = vld [vmem:[#allocation9 + $0x8] sm:$0xff]  ;;  %v1671_v5 = vmov 0.0|0.0   ;;  %v323_v7 = vld [vmem:[#allocation9 + $0x10] sm:$0xff]  ;;  %vm1672_vm0 = vmmov 0   ;;  %v1673_v9 = vmov 0.0  }
  0x97   : > { %v435_v3 = vld [vmem:[#allocation10] sm:$0xff]  ;;  %v1223_v4 = vpack.c.bf16 %v322_v2, %v321_v1  ;;  %1255 = vmatprep.subr.bf16.mxu1 %v1671_v5  ;;  %v436_v6 = vld [vmem:[#allocation10 + $0x8] sm:$0xff]  ;;  %v324_v8 = vld [vmem:[#allocation9 + $0x18] sm:$0xff]  ;;  %1115 = vmatprep.mubr.msk.f32.mxu1 %vm1672_vm0, %v1673_v9  ;;  %s956_s11 = sshll.u32 %s1655_s21, 9  ;;  %s813_s13 = sshll.u32 %s1936_s30, 4  ;;  %s2044_s13 = int_to_ptr.vmem [resolvable:$true] %s813_s13 }
  0x98   : > { %v1942_v10 = vpack.c.bf16 %v436_v6, %v435_v3  ;;  %v1227_v11 = vpack.c.bf16 %v324_v8, %v323_v7  ;;  %v437_v12 = vld [vmem:[#allocation10 + $0x10] sm:$0xff]  ;;  %v438_v13 = vld [vmem:[#allocation10 + $0x18] sm:$0xff]  ;;  %v325_v14 = vld [vmem:[#allocation9 + $0x20] sm:$0xff]  ;;  %s2042_s9 = scalar_lea.hbm %s2099_s5, %s956_s11  ;;  %s799_s24 = scalar_lea.sflag [#allocation6], %s1918_s17 }
  0x99   : > { %1224 = vmatprep.subr.bf16.mxu0 %v1223_v4  ;;  %v326_v15 = vld [vmem:[#allocation9 + $0x28] sm:$0xff]  ;;  %v1945_v16 = vpack.c.bf16 %v438_v13, %v437_v12  ;;  %v439_v18 = vld [vmem:[#allocation10 + $0x20] sm:$0xff]  ;;  %v327_v20 = vld [vmem:[#allocation9 + $0x30] sm:$0xff]  ;;  %s1573_s12 = scalar_lea.vmem %s2044_s13, 512  ;;  %s1674_s21 = smov [#allocation12]  }
  0x9a   : > { %1226 = vmatpush3.bf16.msra.mxu0 %v1223_v4  ;;  %1257 = vmatpush3.bf16.msra.mxu1 %v1942_v10  ;;  %v1231_v17 = vpack.c.bf16 %v326_v15, %v325_v14  ;;  %v440_v19 = vld [vmem:[#allocation10 + $0x28] sm:$0xff]  ;;  %v328_v21 = vld [vmem:[#allocation9 + $0x38] sm:$0xff]  ;;  %v441_v24 = vld [vmem:[#allocation10 + $0x30] sm:$0xff]  ;;  %p1574_p1 = scmp.ne.s32.totalorder %s2044_s13, %s1573_s12  ;;  %s1577_s25 = sshll.u32 %s1674_s21, 4  ;;  %s1578_s25 = int_to_ptr.vmem [resolvable:$false] %s1577_s25 }
  0x9b   : > { %1228 = vmatprep.subr.bf16.mxu0 %v1227_v11  ;;  %1258 = vmatprep.subr.bf16.mxu1 %v1671_v5  ;;  %v1949_v22 = vpack.c.bf16 %v440_v19, %v439_v18  ;;  %v1235_v23 = vpack.c.bf16 %v328_v21, %v327_v20  ;;  %v442_v25 = vld [vmem:[#allocation10 + $0x38] sm:$0xff]  ;;  %v329_v26 = vld [vmem:[#allocation9 + $0x40] sm:$0xff]  ;;  %v330_v27 = vld [vmem:[#allocation9 + $0x48] sm:$0xff]  ;;  %s1579_s7 = scalar_lea.vmem %s1578_s25, 1024  ;;  %p1580_p8 = scmp.lt.s32.totalorder %s2044_s13, %s1578_s25 }
  0x9c   : > { %v317_v28 = vld [vmem:[%s1922_s16] sm:$0xff]  ;;  %v1954_v29 = vpack.c.bf16 %v442_v25, %v441_v24  ;;  %v1239_v30 = vpack.c.bf16 %v330_v27, %v329_v26  ;;  %v443_v31 = vld [vmem:[#allocation10 + $0x40] sm:$0xff]  ;;  %v444_v32 = vld [vmem:[#allocation10 + $0x48] sm:$0xff]  ;;  %p1575_p4 = pnand %p1574_p1, %p1857_p2  ;;  %p1581_p0 = scmp.lt.s32.totalorder %s1579_s7, %s1573_s12 }
  0x9d   : > { %1077 = vmatprep.mubr.f32.mxu0 %v317_v28  ;;  %v331_v33 = vld [vmem:[#allocation9 + $0x50] sm:$0xff]  ;;  %v332_v34 = vld [vmem:[#allocation9 + $0x58] sm:$0xff]  ;;  %v1958_v35 = vpack.c.bf16 %v444_v32, %v443_v31  ;;  %v333_v39 = vld [vmem:[#allocation9 + $0x60] sm:$0xff] }
  0x9e   : > { %1230 = vmatpush3.bf16.msra.mxu0 %v1227_v11  ;;  %1260 = vmatpush3.bf16.msra.mxu1 %v1945_v16  ;;  %v1243_v36 = vpack.c.bf16 %v332_v34, %v331_v33  ;;  %v445_v37 = vld [vmem:[#allocation10 + $0x50] sm:$0xff]  ;;  %v446_v38 = vld [vmem:[#allocation10 + $0x58] sm:$0xff]  ;;  %v334_v40 = vld [vmem:[#allocation9 + $0x68] sm:$0xff]  ;;  %p1576_p6 = pneg %p1575_p4  ;;  %p1582_p5 = por %p1581_p0, %p1580_p8 }
  0x9f   : > { %1232 = vmatprep.subr.bf16.mxu0 %v1231_v17  ;;  %1261 = vmatprep.subr.bf16.mxu1 %v1671_v5  ;;  %v1962_v41 = vpack.c.bf16 %v446_v38, %v445_v37  ;;  %v1247_v42 = vpack.c.bf16 %v334_v40, %v333_v39  ;;  %v447_v43 = vld [vmem:[#allocation10 + $0x60] sm:$0xff]  ;;  %v448_v44 = vld [vmem:[#allocation10 + $0x68] sm:$0xff]  ;;  %v335_v45 = vld [vmem:[#allocation9 + $0x70] sm:$0xff] }
  0xa0   : > { %v336_v46 = vld [vmem:[#allocation9 + $0x78] sm:$0xff]  ;;  %v1966_v47 = vpack.c.bf16 %v448_v44, %v447_v43  ;;  %v449_v49 = vld [vmem:[#allocation10 + $0x70] sm:$0xff]  ;;  %v318_v52 = vld [vmem:[%s1922_s16 + $0x8] sm:$0xff]  ;;  %p1583_p10 = pnand %p1582_p5, %p1576_p6 }
  0xa1   : > { %v1251_v48 = vpack.c.bf16 %v336_v46, %v335_v45  ;;  %v450_v50 = vld [vmem:[#allocation10 + $0x78] sm:$0xff]  ;;  %v433_v53 = vld [vmem:[#allocation2] sm:$0xff]  ;;  %v319_v54 = vld [vmem:[%s1922_s16 + $0x10] sm:$0xff] }
  0xa2   : > { %1234 = vmatpush3.bf16.msra.mxu0 %v1231_v17  ;;  %1263 = vmatpush3.bf16.msra.mxu1 %v1949_v22  ;;  %v1970_v51 = vpack.c.bf16 %v450_v50, %v449_v49  ;;  %v320_v55 = vld [vmem:[%s1922_s16 + $0x18] sm:$0xff] }
  0xa3   : > { %1236 = vmatprep.subr.bf16.mxu0 %v1235_v23  ;;  %1264 = vmatprep.subr.bf16.mxu1 %v1671_v5  ;;  %v946_v56 = vld [vmem:[%s2098_s4] ss:$0 sm:$0xff] }
  0xa6   : > { %1238 = vmatpush3.bf16.msra.mxu0 %v1235_v23  ;;  %1266 = vmatpush3.bf16.msra.mxu1 %v1954_v29 }
  0xa7   : > { %1240 = vmatprep.subr.bf16.mxu0 %v1239_v30  ;;  %1267 = vmatprep.subr.bf16.mxu1 %v1671_v5 }
  0xaa   : > { %1242 = vmatpush3.bf16.msra.mxu0 %v1239_v30  ;;  %1269 = vmatpush3.bf16.msra.mxu1 %v1958_v35 }
  0xab   : > { %1244 = vmatprep.subr.bf16.mxu0 %v1243_v36  ;;  %1270 = vmatprep.subr.bf16.mxu1 %v1671_v5 }
  0xae   : > { %1246 = vmatpush3.bf16.msra.mxu0 %v1243_v36  ;;  %1272 = vmatpush3.bf16.msra.mxu1 %v1962_v41 }
  0xaf   : > { %1248 = vmatprep.subr.bf16.mxu0 %v1247_v42  ;;  %1273 = vmatprep.subr.bf16.mxu1 %v1671_v5 }
  0xb2   : > { %1250 = vmatpush3.bf16.msra.mxu0 %v1247_v42  ;;  %1275 = vmatpush3.bf16.msra.mxu1 %v1966_v47 }
  0xb3   : > { %1252 = vmatprep.subr.bf16.mxu0 %v1251_v48  ;;  %1276 = vmatprep.subr.bf16.mxu1 %v1671_v5 }
  0xb6   : > { %1254 = vmatpush3.bf16.msra.mxu0 %v1251_v48  ;;  %1278 = vmatpush3.bf16.msra.mxu1 %v1970_v51 }
  0xb7   : > { %1279 = vmatprep.subr.bf16.mxu0 %v1671_v5  ;;  %1303 = vmatprep.subr.bf16.mxu1 %v1671_v5 }
  0xb9   : > { %1078 = vmatmul.mubr.f32.vlgmr.msra.gmra.mrb[0].mxu0 %v318_v52  ;;  %1116 = vmatmul.mubr.f32.vlgmr.msra.gmra.mrb[0].mxu1 %v433_v53 }
  0xba   : > { %1281 = vmatpush3.bf16.msra.mxu0 %v1942_v10  ;;  %1305 = vmatpush3.bf16.msra.mxu1 %v1942_v10 }
  0xbb   : > { %1282 = vmatprep.subr.bf16.mxu0 %v1671_v5  ;;  %1306 = vmatprep.subr.bf16.mxu1 %v1671_v5 }
  0xbc   : > { %1185 = vmatprep.mubr.msk.f32.mxu1 %vm1672_vm0, %v1673_v9  ;;  %1080 = vmatprep.mubr.f32.mxu0 %v319_v54 }
  0xbd   : > { %1081 = vmatmul.mubr.f32.gmra.mrb[2].mxu0 %v320_v55 }
  0xbe   : > { %1284 = vmatpush3.bf16.msra.mxu0 %v1945_v16  ;;  %1308 = vmatpush3.bf16.msra.mxu1 %v1945_v16 }
  0xbf   : > { %1285 = vmatprep.subr.bf16.mxu0 %v1671_v5  ;;  %1309 = vmatprep.subr.bf16.mxu1 %v1671_v5 }
  0xc0   : > { %1150 = vmatprep.mubr.msk.f32.mxu0 %vm1672_vm0, %v1673_v9 }
  0xc2   : > { %1287 = vmatpush3.bf16.msra.mxu0 %v1949_v22  ;;  %1311 = vmatpush3.bf16.msra.mxu1 %v1949_v22 }
  0xc3   : > { %1288 = vmatprep.subr.bf16.mxu0 %v1671_v5  ;;  %1312 = vmatprep.subr.bf16.mxu1 %v1671_v5 }
  0xc6   : > { %1290 = vmatpush3.bf16.msra.mxu0 %v1954_v29  ;;  %1314 = vmatpush3.bf16.msra.mxu1 %v1954_v29 }
  0xc7   : > { %1291 = vmatprep.subr.bf16.mxu0 %v1671_v5  ;;  %1315 = vmatprep.subr.bf16.mxu1 %v1671_v5 }
  0xca   : > { %1293 = vmatpush3.bf16.msra.mxu0 %v1958_v35  ;;  %1317 = vmatpush3.bf16.msra.mxu1 %v1958_v35 }
  0xcb   : > { %1294 = vmatprep.subr.bf16.mxu0 %v1671_v5  ;;  %1318 = vmatprep.subr.bf16.mxu1 %v1671_v5 }
  0xce   : > { %1296 = vmatpush3.bf16.msra.mxu0 %v1962_v41  ;;  %1320 = vmatpush3.bf16.msra.mxu1 %v1962_v41 }
  0xcf   : > { %1297 = vmatprep.subr.bf16.mxu0 %v1671_v5  ;;  %1321 = vmatprep.subr.bf16.mxu1 %v1671_v5 }
  0xd2   : > { %1299 = vmatpush3.bf16.msra.mxu0 %v1966_v47  ;;  %1323 = vmatpush3.bf16.msra.mxu1 %v1966_v47 }
  0xd3   : > { %1300 = vmatprep.subr.bf16.mxu0 %v1671_v5  ;;  %1324 = vmatprep.subr.bf16.mxu1 %v1671_v5 }
  0xd6   : > { %1302 = vmatpush3.bf16.msra.mxu0 %v1970_v51  ;;  %1326 = vmatpush3.bf16.msra.mxu1 %v1970_v51 }
  0xd7   : > { %1327 = vmatprep.subr.bf16.mxu0 %v1671_v5 }
 0x18c   : > { %v1079_v57 = vpop.f32.mrb[0].mxu0  ;;  %v517_v58 = vpop.f32.mrb[0].mxu1 }
 0x18d   : > { %v410_v59 = vpop.f32.mrb[1].mxu0  ;;  %v1117_v60 = vpop.f32.mrb[1].mxu1  ;;  %v416_v2 = vadd.f32 %v1079_v57, %v946_v56 }
 0x18e   : > { %v411_v61 = vadd.f32 %v946_v56, %v410_v59 }
 0x190   : > { %v521_v62 = vadd.f32 %v517_v58, %v411_v61  ;;  %v1082_v0 = vpop.f32.mrb[2].mxu0 }
 0x191   : > { %v420_v1 = vpop.f32.mrb[3].mxu0  ;;  %v426_v12 = vadd.f32 %v1082_v0, %v946_v56 }
 0x192   : > { %1451 = vtanh.f32 %v521_v62  ;;  %v421_v8 = vadd.f32 %v946_v56, %v420_v1 }
 0x19c   : > { %v1452_v63 = vpop.eup %1451 }
 0x19d   : > { %523 = vst [vmem:[%s1936_s30] sm:$0xff] %v1452_v63  ;;  %1151 = vmatmul.mubr.f32.vlgmr.msra.gmra.mrb[4].mxu0 %v1452_v63 }
 0x19e   : > { %1329 = vmatpush3.bf16.msra.mxu0 %v1942_v10  ;;  %1220 = vmatprep.mubr.msk.f32.mxu0 %vm1672_vm0, %v1673_v9 }
 0x19f   : > { %1330 = vmatprep.subr.bf16.mxu0 %v1671_v5 }
 0x1a2   : > { %1332 = vmatpush3.bf16.msra.mxu0 %v1945_v16 }
 0x1a3   : > { %1333 = vmatprep.subr.bf16.mxu0 %v1671_v5 }
 0x1a6   : > { %1335 = vmatpush3.bf16.msra.mxu0 %v1949_v22 }
 0x1a7   : > { %1336 = vmatprep.subr.bf16.mxu0 %v1671_v5 }
 0x1aa   : > { %1338 = vmatpush3.bf16.msra.mxu0 %v1954_v29 }
 0x1ab   : > { %1339 = vmatprep.subr.bf16.mxu0 %v1671_v5 }
 0x1ae   : > { %1341 = vmatpush3.bf16.msra.mxu0 %v1958_v35 }
 0x1af   : > { %1342 = vmatprep.subr.bf16.mxu0 %v1671_v5 }
 0x1b2   : > { %1344 = vmatpush3.bf16.msra.mxu0 %v1962_v41 }
 0x1b3   : > { %1345 = vmatprep.subr.bf16.mxu0 %v1671_v5 }
 0x1b6   : > { %1347 = vmatpush3.bf16.msra.mxu0 %v1966_v47 }
 0x1b7   : > { %1348 = vmatprep.subr.bf16.mxu0 %v1671_v5 }
 0x1ba   : > { %1350 = vmatpush3.bf16.msra.mxu0 %v1970_v51 }
 0x270   : > { %v607_v3 = vpop.f32.mrb[4].mxu0 }
 0x271   : > { %v611_v4 = vadd.f32 %v607_v3, %v416_v2  ;;  %v1152_v6 = vpop.f32.mrb[5].mxu0 }
 0x273   : > { %1453 = vtanh.f32 %v611_v4 }
 0x27d   : > { %v1454_v7 = vpop.eup %1453 }
 0x27e   : > { %947 = vst [vmem:[%s1936_s30 + $0x8] sm:$0xff] %v1454_v7  ;;  %1186 = vmatmul.mubr.f32.vlgmr.msra.gmra.mrb[2].mxu1 %v1454_v7 }
 0x351   : > { %v698_v9 = vpop.f32.mrb[2].mxu1 }
 0x352   : > { %v702_v10 = vadd.f32 %v698_v9, %v421_v8  ;;  %v1187_v5 = vpop.f32.mrb[3].mxu1 }
 0x354   : > { %1455 = vtanh.f32 %v702_v10 }
 0x35e   : > { %v1456_v11 = vpop.eup %1455 }
 0x35f   : > { %948 = vst [vmem:[%s1936_s30 + $0x10] sm:$0xff] %v1456_v11  ;;  %1221 = vmatmul.mubr.f32.vlgmr.msra.gmra.mrb[6].mxu0 %v1456_v11 }
 0x432   : > { %v789_v13 = vpop.f32.mrb[6].mxu0 }
 0x433   : > { %v793_v14 = vadd.f32 %v789_v13, %v426_v12  ;;  %v1222_v15 = vpop.f32.mrb[7].mxu0 }
 0x435   : > { %1457 = vtanh.f32 %v793_v14 }
 0x43f   : > { %v1458_v16 = vpop.eup %1457 }
 0x440   : > { %949 = vst [vmem:[%s1936_s30 + $0x18] sm:$0xff] %v1458_v16  ;;  %797 = vst [vmem:[#allocation2] sm:$0xff] %v1458_v16 }
 0x441   : > { %1586 = shalt.err (!%p1583_p10)
}
 0x442   : > { %s1587_s8 = scalar_lea.hbm %s2042_s9, 512  ;;  %s1591_s30 = scalar_lea.hbm %s2099_s5, 1024 }
 0x443   : > { %p1588_p13 = scmp.ne.s32.totalorder %s2042_s9, %s1587_s8  ;;  %p1592_p7 = scmp.lt.u32.totalorder %s2042_s9, %s2099_s5 }
 0x444   : > { %p1593_p11 = scmp.lt.u32.totalorder %s1591_s30, %s1587_s8  ;;  %p1595_p1 = scmp.lt.u32.totalorder %s1587_s8, %s2042_s9 }
 0x445   : > { %p1589_p9 = pnand %p1588_p13, %p1857_p2 }
 0x446   : > { %p1594_p12 = por %p1593_p11, %p1592_p7 }
 0x447   : > { %p1590_p3 = pneg %p1589_p9 }
 0x448   : > { %p1596_p4 = por %p1595_p1, %p1594_p12 }
 0x44a   : > { %p1597_p6 = pnand %p1596_p4, %p1590_p3 }
 0x44c   : > { %1600 = shalt.err (!%p1597_p6)
}
 0x44d   : > { %s1675_s11 = smov 128   ;;  %s1676_s27 = smov 8  }
 0x44e   : > { %1365 = dma.vmem_to_hbm [thread:$0]  (%p1857_p2), %s2044_s13, 512, %s2042_s9, %s799_s24, %s1675_s11, %s1675_s11, %s1676_s27  }
 0x44f PF: > { %s828_s1 = sand.u32 1, %s1643_s18   ;;  %p2119_p8 = scmp.ne.s32.totalorder %s2108_s29, 0 }
 0x450   : > { %p2120_p0 = scmp.ge.s32.totalorder %s1663_s23, 2  ;;  %s829_s12 = scalar_lea.sflag [#allocation6], %s828_s1 }
 0x452   : > { %p1382_p5 = pnand %p2120_p0, %p2119_p8 }
 0x454   : > { %1638 = dma.done.wait (!%p1382_p5), %s829_s12, 512  }
 0x455   : > { %1640 = vsyncadd (!%p1382_p5), %s829_s12, 4294966784  ;;  %s23_s23 = sadd.s32 1, %s1663_s23   ;;  %s2121_s18 = smov %s1647_s19 }
 0x456   : > { %p20_p10 = scmp.ge.s32.totalorder %s23_s23, 4   ;;  %s2122_s19 = smov %s1651_s20 }
 0x457   : > { %s2123_s20 = smov %s1869_s6  ;;  %s2124_s21 = smov %s1659_s22 }
 0x458   : > { %s2125_s22 = smov %s2127_s10  ;;  %22 = sbr.rel (!%p20_p10) target bundleno = 10 (0xa), region = 105 }
 0x45f   :  { %834 = vsyncpa [#allocation5], 1 }
 0x460   :  { %836 = vsyncpa [#allocation5 + $0x1], 1 }
 0x461   :  { %837 = vsyncpa [#allocation8], 1 }
 0x462   :  { %838 = vsyncpa [#allocation11], 1 }
 0x463   :  { %839 = vsyncpa [#allocation6], 1 }
 0x464   :  { %841 = vsyncpa [#allocation6 + $0x1], 1 }

</bundles_post_ra>
